<compile_context>
chip_gen: v6e
topology: v6e:2x2x1
jax: 0.10.0
libtpu: 0.0.40
codegen_flags: <defaults>
</compile_context>

<pallas_src>
import functools

import jax
import jax.numpy as jnp
from jax.experimental import pallas as pl
from jax.experimental.pallas import tpu as pltpu

LN_EPS = 1e-5  # PyTorch nn.LayerNorm default


def _round_up(x, m):
    return (x + m - 1) // m * m


def _choose_tile_n(hw_pad, tile_n_max):
    """Largest multiple-of-128 divisor of hw_pad that is <= tile_n_max,
    preferring choices that give >= 2 pixel tiles (v7x megacore sharding)."""
    n_units = hw_pad // 128
    divisors = [k * 128 for k in range(1, n_units + 1)
                if n_units % k == 0 and k * 128 <= tile_n_max]
    multi = [t for t in divisors if hw_pad // t >= 2]
    return max(multi) if multi else max(divisors)


# ---------------------------------------------------------------------------
# Fused kernel: 1x1-conv + bias + LayerNorm (MSPatchEmbed)  ->  1x1-conv +
# residual add (recon head substitute), all on one [C, TILE_N] pixel tile.
# Both 1x1 convs are MXU matmuls; LN affine is pre-folded into the recon
# weights so `yn` never materializes.
# ---------------------------------------------------------------------------
def _mhpt_fused_kernel(ms_ref, we_ref, be_ref, wp_ref, bp_ref, wps_ref, o_ref):
    # ms_ref  : (Cms, TN)   pixel tile: channels on sublanes, pixels on lanes
    # we_ref  : (D, Cms)    embed 1x1-conv weight (Conv2d weight squeezed)
    # be_ref  : (D, 1)      embed conv bias
    # wp_ref  : (Cms, D)    recon 1x1-conv weight with LN gamma folded in
    # bp_ref  : (Cms, 1)    recon bias with LN beta folded in
    # wps_ref : (Cms, 1)    row-sums of wp (for the folded mean term)
    # o_ref   : (Cms, TN)
    x = ms_ref[...]                                     # (Cms, TN) f32
    d = we_ref.shape[0]

    # --- MSPatchEmbed 1x1 conv on the MXU --------------------------------
    y = jnp.dot(we_ref[...], x,
                preferred_element_type=jnp.float32,
                precision=jax.lax.Precision.HIGHEST) + be_ref[...]   # (D, TN)

    # --- one-pass LayerNorm statistics over the channel (sublane) axis ----
    inv_d = 1.0 / d
    mean = jnp.sum(y, axis=0, keepdims=True) * inv_d                  # (1, TN)
    ex2 = jnp.sum(y * y, axis=0, keepdims=True) * inv_d               # E[y^2]
    inv_std = jax.lax.rsqrt(ex2 - mean * mean + LN_EPS)               # (1, TN)

    # TODO(synk): HAT/AHAT/SAT transformer blocks would transform the
    #             normalized embedding here (identity pass-through).

    # --- recon 1x1 conv (LN affine pre-folded) on the MXU + residual ------
    z = jnp.dot(wp_ref[...], y,
                preferred_element_type=jnp.float32,
                precision=jax.lax.Precision.HIGHEST)                  # (Cms, TN)
    r = inv_std * (z - mean * wps_ref[...])                           # (Cms, TN)
    o_ref[...] = (x + r + bp_ref[...]).astype(o_ref.dtype)


def fused_embed_recon(ms, ms_w, ms_b, ms_gamma, ms_beta, rec_w, rec_b,
                      *, tile_n_max=2048):
    """ms: (B, Cms, HW) NCHW-flattened. Returns ms + recon(LN(embed(ms)))."""
    B, cms, hw = ms.shape
    d = ms_w.shape[0]

    # Trace-time fold of the LayerNorm affine into the recon conv.  Valid only
    # while the transformer block stack is identity (see TODO at top).
    wp = rec_w * ms_gamma[None, :]                      # (Cms, D)
    bp = rec_w @ ms_beta + rec_b                        # (Cms,)
    wps = jnp.sum(wp, axis=1)                           # (Cms,)

    # Pad only up to the next multiple of 128 (zero-cost for 128-aligned hw);
    # tile_n is a divisor of hw_pad so no whole-tensor pad/slice round trip.
    hw_pad = _round_up(hw, 128)
    pad = hw_pad - hw
    if pad:
        # Padded lanes stay lane-local (garbage-but-finite) and are sliced off.
        ms = jnp.pad(ms, ((0, 0), (0, 0), (0, pad)))
    tile_n = _choose_tile_n(hw_pad, tile_n_max)
    n_tiles = hw_pad // tile_n

    flops_per_pix = 2 * d * cms + d + 3 * d + 2 * cms * d + 4 * cms + 8
    cost = pl.CostEstimate(
        flops=B * hw_pad * flops_per_pix,
        transcendentals=B * hw_pad,
        bytes_accessed=2 * B * cms * hw_pad * 4)

    out = pl.pallas_call(
        _mhpt_fused_kernel,
        out_shape=jax.ShapeDtypeStruct((B, cms, hw_pad), jnp.float32),
        grid_spec=pltpu.PrefetchScalarGridSpec(
            num_scalar_prefetch=0,
            grid=(B, n_tiles),
            in_specs=[
                pl.BlockSpec((None, cms, tile_n), lambda b, t: (b, 0, t)),
                pl.BlockSpec((d, cms), lambda b, t: (0, 0)),
                pl.BlockSpec((d, 1), lambda b, t: (0, 0)),
                pl.BlockSpec((cms, d), lambda b, t: (0, 0)),
                pl.BlockSpec((cms, 1), lambda b, t: (0, 0)),
                pl.BlockSpec((cms, 1), lambda b, t: (0, 0)),
            ],
            out_specs=pl.BlockSpec((None, cms, tile_n), lambda b, t: (b, 0, t)),
        ),
        # Both grid axes independent -> shardable across v7x TensorCores.
        compiler_params=pltpu.CompilerParams(
            dimension_semantics=("parallel", "parallel")),
        cost_estimate=cost,
    )(ms, ms_w, ms_b.reshape(d, 1), wp, bp.reshape(cms, 1),
      wps.reshape(cms, 1))

    if pad:
        out = out[:, :, :hw]
    return out


# ---------------------------------------------------------------------------
# Parameter construction (deterministic, mirrors module __init__ shapes)
# ---------------------------------------------------------------------------
def init_mhpt_params(key, *, ms_chans=4, embed_dim=8, n_scale=1):
    assert n_scale == 1, "n_scale=1 (only proj1 / 1x1 conv) implemented"
    d = embed_dim * n_scale
    k = jax.random.split(key, 6)
    return {
        # MSPatchEmbed(ms): Conv2d(ms_chans, d, k=1) weight (out,in) + bias, LN(d)
        "ms_w": jax.random.normal(k[0], (d, ms_chans), jnp.float32) * 0.1,
        "ms_b": jax.random.normal(k[1], (d,), jnp.float32) * 0.01,
        "ms_gamma": jnp.ones((d,), jnp.float32),
        "ms_beta": jnp.zeros((d,), jnp.float32),
        # MSPatchEmbed(pan) params kept for parity with the torch module but
        # unused while the HAT blocks are identity (see TODO at top).
        "pan_w": jax.random.normal(k[2], (d, 1), jnp.float32) * 0.1,
        "pan_b": jax.random.normal(k[3], (d,), jnp.float32) * 0.01,
        # recon head substitute: 1x1 conv d -> ms_chans
        "rec_w": jax.random.normal(k[4], (ms_chans, d), jnp.float32) * 0.1,
        "rec_b": jax.random.normal(k[5], (ms_chans,), jnp.float32) * 0.01,
    }


# ---------------------------------------------------------------------------
# MHPT forward (static config passed as keywords -> no tracer slicing)
# ---------------------------------------------------------------------------
def mhpt_forward(x_nchw, params, *, ms_chans, tile_n_max=2048):
    """x_nchw: [B, ms_chans+1, H, W] -> [B, ms_chans, H, W] (NCHW, like torch)."""
    B, ctot, H, W = x_nchw.shape
    assert ctot == ms_chans + 1

    ms = x_nchw[:, :ms_chans]                     # (B, Cms, H, W), static slice
    # pan = x_nchw[:, ms_chans:ms_chans + 1]
    # TODO(synk): pan embedding feeds only the undefined (identity) HAT blocks,
    #             so its compute is skipped.

    ms_flat = ms.reshape(B, ms_chans, H * W)      # NCHW-flattened, no transpose
    out_flat = fused_embed_recon(
        ms_flat, params["ms_w"], params["ms_b"],
        params["ms_gamma"], params["ms_beta"],
        params["rec_w"], params["rec_b"],
        tile_n_max=tile_n_max)
    return out_flat.reshape(B, ms_chans, H, W)


# Pure-JAX reference (unfolded math) for correctness checking.
def mhpt_reference(x_nchw, params, *, ms_chans):
    B, _, H, W = x_nchw.shape
    ms = x_nchw[:, :ms_chans]
    ms_flat = jnp.transpose(ms, (0, 2, 3, 1)).reshape(-1, ms_chans)

    y = ms_flat @ params["ms_w"].T + params["ms_b"]
    mean = y.mean(-1, keepdims=True)
    var = ((y - mean) ** 2).mean(-1, keepdims=True)
    y = (y - mean) / jnp.sqrt(var + LN_EPS) * params["ms_gamma"] + params["ms_beta"]

    out_flat = ms_flat + y @ params["rec_w"].T + params["rec_b"]
    return out_flat.reshape(B, H, W, ms_chans).transpose(0, 3, 1, 2)


if __name__ == "__main__":
    key = jax.random.PRNGKey(0)
    kx, kp = jax.random.split(key)

    B, ms_chans, H, W = 2, 4, 16, 16
    x = jax.random.normal(kx, (B, ms_chans + 1, H, W), jnp.float32)

    params = init_mhpt_params(kp, ms_chans=ms_chans, embed_dim=8, n_scale=1)

    fwd = jax.jit(functools.partial(mhpt_forward, ms_chans=ms_chans,
                                    tile_n_max=2048))
    out = jax.block_until_ready(fwd(x, params))

    ref = mhpt_reference(x, params, ms_chans=ms_chans)
    assert out.shape == (B, ms_chans, H, W), out.shape
    assert jnp.allclose(out, ref, atol=1e-3, rtol=1e-3), "mismatch vs reference"

    print("KERNEL_OK")
</pallas_src>

<mosaic_0001>
module attributes {stable_mosaic.version = 11 : i64} {
  func.func @_mhpt_fused_kernel(%arg0: i32, %arg1: i32, %arg2: memref<1x4x128xf32, #tpu.memory_space<vmem>>, %arg3: memref<8x4xf32, #tpu.memory_space<vmem>>, %arg4: memref<8x1xf32, #tpu.memory_space<vmem>>, %arg5: memref<4x8xf32, #tpu.memory_space<vmem>>, %arg6: memref<4x1xf32, #tpu.memory_space<vmem>>, %arg7: memref<4x1xf32, #tpu.memory_space<vmem>>, %arg8: memref<1x4x128xf32, #tpu.memory_space<vmem>>) attributes {dimension_semantics = [#tpu.dimension_semantics<parallel>, #tpu.dimension_semantics<parallel>], iteration_bounds = array<i64: 2, 2>, scalar_prefetch = 0 : i64, scratch_operands = 0 : i64, tpu.core_type = #tpu.core_type<tc>, window_params = [{transform_indices = @transform_0, window_bounds = array<i64: 1, 4, 128>}, {pipeline_mode = #tpu.pipeline_mode<synchronous>, transform_indices = @transform_1, window_bounds = array<i64: 8, 4>}, {pipeline_mode = #tpu.pipeline_mode<synchronous>, transform_indices = @transform_2, window_bounds = array<i64: 8, 1>}, {pipeline_mode = #tpu.pipeline_mode<synchronous>, transform_indices = @transform_3, window_bounds = array<i64: 4, 8>}, {pipeline_mode = #tpu.pipeline_mode<synchronous>, transform_indices = @transform_4, window_bounds = array<i64: 4, 1>}, {pipeline_mode = #tpu.pipeline_mode<synchronous>, transform_indices = @transform_5, window_bounds = array<i64: 4, 1>}, {transform_indices = @transform_6, window_bounds = array<i64: 1, 4, 128>}]} {
    %c0 = arith.constant 0 : index
    %c0_0 = arith.constant 0 : index
    %c0_1 = arith.constant 0 : index
    %0 = vector.load %arg2[%c0, %c0_0, %c0_1] : memref<1x4x128xf32, #tpu.memory_space<vmem>>, vector<1x4x128xf32>
    %1 = vector.shape_cast %0 : vector<1x4x128xf32> to vector<4x128xf32>
    %c0_2 = arith.constant 0 : index
    %c0_3 = arith.constant 0 : index
    %2 = vector.load %arg3[%c0_2, %c0_3] : memref<8x4xf32, #tpu.memory_space<vmem>>, vector<8x4xf32>
    %cst = arith.constant dense<0.000000e+00> : vector<8x128xf32>
    %3 = tpu.matmul %2, %1, %cst {dimension_numbers = #tpu.dot_dimension_numbers<[1], [0], [0], [1], [0, 0, 1, 1], [], []>, precision = #tpu.contract_precision<fp32>} : vector<8x4xf32>, vector<4x128xf32>, vector<8x128xf32> -> vector<8x128xf32>
    %c0_4 = arith.constant 0 : index
    %c0_5 = arith.constant 0 : index
    %4 = vector.load %arg4[%c0_4, %c0_5] : memref<8x1xf32, #tpu.memory_space<vmem>>, vector<8x1xf32>
    %5 = vector.broadcast %4 : vector<8x1xf32> to vector<8x128xf32>
    %6 = arith.addf %3, %5 : vector<8x128xf32>
    %cst_6 = arith.constant dense<0.000000e+00> : vector<128xf32>
    %7 = vector.multi_reduction <add>, %6, %cst_6 [0] : vector<8x128xf32> to vector<128xf32>
    %8 = vector.shape_cast %7 : vector<128xf32> to vector<1x128xf32>
    %cst_7 = arith.constant 1.250000e-01 : f32
    %9 = vector.broadcast %cst_7 : f32 to vector<1x128xf32>
    %10 = arith.mulf %8, %9 : vector<1x128xf32>
    %11 = arith.mulf %6, %6 : vector<8x128xf32>
    %cst_8 = arith.constant dense<0.000000e+00> : vector<128xf32>
    %12 = vector.multi_reduction <add>, %11, %cst_8 [0] : vector<8x128xf32> to vector<128xf32>
    %13 = vector.shape_cast %12 : vector<128xf32> to vector<1x128xf32>
    %cst_9 = arith.constant 1.250000e-01 : f32
    %14 = vector.broadcast %cst_9 : f32 to vector<1x128xf32>
    %15 = arith.mulf %13, %14 : vector<1x128xf32>
    %16 = arith.mulf %10, %10 : vector<1x128xf32>
    %17 = arith.subf %15, %16 : vector<1x128xf32>
    %cst_10 = arith.constant 9.99999974E-6 : f32
    %18 = vector.broadcast %cst_10 : f32 to vector<1x128xf32>
    %19 = arith.addf %17, %18 : vector<1x128xf32>
    %20 = math.rsqrt %19 : vector<1x128xf32>
    %c0_11 = arith.constant 0 : index
    %c0_12 = arith.constant 0 : index
    %21 = vector.load %arg5[%c0_11, %c0_12] : memref<4x8xf32, #tpu.memory_space<vmem>>, vector<4x8xf32>
    %cst_13 = arith.constant dense<0.000000e+00> : vector<4x128xf32>
    %22 = tpu.matmul %21, %6, %cst_13 {dimension_numbers = #tpu.dot_dimension_numbers<[1], [0], [0], [1], [0, 0, 1, 1], [], []>, precision = #tpu.contract_precision<fp32>} : vector<4x8xf32>, vector<8x128xf32>, vector<4x128xf32> -> vector<4x128xf32>
    %c0_14 = arith.constant 0 : index
    %c0_15 = arith.constant 0 : index
    %23 = vector.load %arg7[%c0_14, %c0_15] : memref<4x1xf32, #tpu.memory_space<vmem>>, vector<4x1xf32>
    %24 = vector.broadcast %10 : vector<1x128xf32> to vector<4x128xf32>
    %25 = vector.broadcast %23 : vector<4x1xf32> to vector<4x128xf32>
    %26 = arith.mulf %24, %25 : vector<4x128xf32>
    %27 = arith.subf %22, %26 : vector<4x128xf32>
    %28 = vector.broadcast %20 : vector<1x128xf32> to vector<4x128xf32>
    %29 = arith.mulf %28, %27 : vector<4x128xf32>
    %30 = arith.addf %1, %29 : vector<4x128xf32>
    %c0_16 = arith.constant 0 : index
    %c0_17 = arith.constant 0 : index
    %31 = vector.load %arg6[%c0_16, %c0_17] : memref<4x1xf32, #tpu.memory_space<vmem>>, vector<4x1xf32>
    %32 = vector.broadcast %31 : vector<4x1xf32> to vector<4x128xf32>
    %33 = arith.addf %30, %32 : vector<4x128xf32>
    %c0_18 = arith.constant 0 : index
    %c0_19 = arith.constant 0 : index
    %c0_20 = arith.constant 0 : index
    %34 = vector.load %arg8[%c0_18, %c0_19, %c0_20] : memref<1x4x128xf32, #tpu.memory_space<vmem>>, vector<1x4x128xf32>
    %35 = vector.shape_cast %34 : vector<1x4x128xf32> to vector<4x128xf32>
    %36 = vector.shape_cast %33 : vector<4x128xf32> to vector<1x4x128xf32>
    tpu.vector_store %arg8[%c0_18, %c0_19, %c0_20], %36 {strides = array<i32>} : memref<1x4x128xf32, #tpu.memory_space<vmem>>, vector<1x4x128xf32>,
    return
  }
  func.func @transform_0(%arg0: i32, %arg1: i32) -> (i32, i32, i32) {
    %c0_i32 = arith.constant 0 : i32
    %c0_i32_0 = arith.constant 0 : i32
    return %arg0, %c0_i32, %arg1 : i32, i32, i32
  }
  func.func @transform_1(%arg0: i32, %arg1: i32) -> (i32, i32) {
    %c0_i32 = arith.constant 0 : i32
    %c0_i32_0 = arith.constant 0 : i32
    %c0_i32_1 = arith.constant 0 : i32
    return %c0_i32, %c0_i32_0 : i32, i32
  }
  func.func @transform_2(%arg0: i32, %arg1: i32) -> (i32, i32) {
    %c0_i32 = arith.constant 0 : i32
    %c0_i32_0 = arith.constant 0 : i32
    %c0_i32_1 = arith.constant 0 : i32
    return %c0_i32, %c0_i32_0 : i32, i32
  }
  func.func @transform_3(%arg0: i32, %arg1: i32) -> (i32, i32) {
    %c0_i32 = arith.constant 0 : i32
    %c0_i32_0 = arith.constant 0 : i32
    %c0_i32_1 = arith.constant 0 : i32
    return %c0_i32, %c0_i32_0 : i32, i32
  }
  func.func @transform_4(%arg0: i32, %arg1: i32) -> (i32, i32) {
    %c0_i32 = arith.constant 0 : i32
    %c0_i32_0 = arith.constant 0 : i32
    %c0_i32_1 = arith.constant 0 : i32
    return %c0_i32, %c0_i32_0 : i32, i32
  }
  func.func @transform_5(%arg0: i32, %arg1: i32) -> (i32, i32) {
    %c0_i32 = arith.constant 0 : i32
    %c0_i32_0 = arith.constant 0 : i32
    %c0_i32_1 = arith.constant 0 : i32
    return %c0_i32, %c0_i32_0 : i32, i32
  }
  func.func @transform_6(%arg0: i32, %arg1: i32) -> (i32, i32, i32) {
    %c0_i32 = arith.constant 0 : i32
    %c0_i32_0 = arith.constant 0 : i32
    return %arg0, %c0_i32, %arg1 : i32, i32, i32
  }
}

</mosaic_0001>

<bundles_post_ra>
// kernel: mhpt_forward.1
= control target key start
LH: loop header
LB: loop body
LE: loop exit
PB: predicated region body
PF: predicated region fallthrough
CT: control target
= control target key end

     0   :  { %s1539_s21 = smov 0   ;;  %s1541_s22 = smov 0   ;;  %s1652_s0 = inlined_call_operand.vmem [shape: f32[2,4,256], index: 0, kind: input, shape index: {}]   ;;  %s1653_s1 = inlined_call_operand.vmem [shape: f32[8,4], index: 1, kind: input, shape index: {}]   ;;  %s1654_s2 = inlined_call_operand.vmem [shape: f32[8,1], index: 2, kind: input, shape index: {}]   ;;  %s1655_s3 = inlined_call_operand.vmem [shape: f32[4,8], index: 3, kind: input, shape index: {}]   ;;  %s1656_s4 = inlined_call_operand.vmem [shape: f32[4,1], index: 4, kind: input, shape index: {}]   ;;  %s1657_s5 = inlined_call_operand.vmem [shape: f32[4,1], index: 5, kind: input, shape index: {}]   ;;  %s1658_s6 = inlined_call_operand.vmem [shape: f32[2,4,256], index: 6, kind: output, shape index: {}]  }
   0x1   :  { %s1543_s23 = smov 0   ;;  %s1545_s24 = smov 0  }
   0x2   :  { %s1547_s25 = smov 0  }
   0x3 LB: > { %s25_s26 = sadd.s32 1, %s1491_s23  ;;  %s28_s27 = sadd.s32 1, %s1495_s24  ;;  %s1499_s25 = sphi %s1547_s25, %s16_s25   ;;  %s1495_s24 = sphi %s1545_s24, %s1662_s24   ;;  %s1491_s23 = sphi %s1543_s23, %s1661_s23   ;;  %s1487_s22 = sphi %s1541_s22, %s1660_s22   ;;  %s1483_s21 = sphi %s1539_s21, %s1659_s21  }
   0x4   : > { %p26_p0 = scmp.ge.s32.totalorder %s25_s26, 2  ;;  %p1323_p1 = scmp.ge.s32.totalorder %s1499_s25, 1 }
   0x5   : > { %p231_p2 = scmp.lt.s32.totalorder %s1499_s25, 5 }
   0x6   : > { %s1664_s26 = smov (%p26_p0, %s25_s26), 0  ;;  %s1666_s27 = smov (!%p26_p0, %s28_s27), %s1495_s24 }
   0x7   : > { %p232_p3 = pnand %p1323_p1, %p231_p2  ;;  %p30_p4 = scmp.ge.s32.totalorder %s1666_s27, 2 }
   0x8   : > { %p267_p5 = scmp.lt.s32.totalorder (!%p232_p3), %s1487_s22, 1  ;;  %p269_p6 = scmp.lt.s32.totalorder (!%p232_p3), %s1483_s21, 1 }
   0x9   : > { %s1668_s27 = smov (%p30_p4, %s1666_s27), 0  ;;  %235 = sbr.rel (%p232_p3) target bundleno = 459 (0x1cb), region = 44 }
   0xe   : > { %v284_v0 = vld [vmem:[%s1653_s1] sm:$0xff]  ;;  %v1501_v1 = vmov 0.0   ;;  %vm1502_vm0 = vmmov 0   ;;  %vm291_vm1 = vcmask 31744   ;;  %s1670_s22 = smov (!%p267_p5, %s1487_s22), 1  ;;  %s1672_s21 = smov (!%p269_p6, %s1483_s21), 1 }
   0xf   : > { %1354 = vmatprep.subr.mxu0 %v1501_v1  ;;  %1356 = vmatprep.mubr.msk.f32.mxu0 %vm1502_vm0, %v1501_v1  ;;  %v285_v2 = vld [vmem:[%s1654_s2] sm:$0xff]  ;;  %v293_v3 = vsel %vm291_vm1, %v284_v0, 0  ;;  %v1503_v5 = vmov 0   ;;  %s1324_s8 = sshll.u32 %s1670_s22, 1  ;;  %vm295_vm2 = vcmask 1043456   ;;  %vm765_vm3 = vcmask 64512  }
  0x10   : > { %1359 = vmatprep.subr.mxu1 %v1501_v1  ;;  %1361 = vmatprep.mubr.msk.f32.mxu1 %vm1502_vm0, %v1501_v1  ;;  %v365_v4 = vand.u32 4294901760, %v293_v3  ;;  %s1581_s9 = sadd.s32 %s1324_s8, %s1672_s21  ;;  %v1215_v7 = vld [vmem:[%s1657_s5] sm:$0xf] }
  0x11   : > { %1457 = vset.pattern.permute.xlu0 %v1503_v5  ;;  %1458 = vset.pattern.permute.xlu1 %v1503_v5  ;;  %s1325_s12 = sshll.u32 %s1581_s9, 2  ;;  %v1225_v18 = vld [vmem:[%s1656_s4] sm:$0xf] }
  0x12   : > { %288 = vperm.xlu0 %1457, %v285_v2   ;;  %v366_v6 = vsub.f32 %v293_v3, %v365_v4  ;;  %s274_s15 = scalar_lea.vmem %s1652_s0, %s1325_s12  ;;  %1228 = vperm.xlu1 %1458, %v1225_v18   ;;  %v764_v19 = vld [vmem:[%s1655_s3] sm:$0xf]  ;;  %s282_s22 = scalar_lea.vmem %s1658_s6, %s1325_s12 }
  0x13   : > { %v1592_v9 = vld [vmem:[%s274_s15] sm:$0xf]  ;;  %v767_v20 = vsel %vm765_vm3, %v764_v19, 0 }
  0x14   : > { %v367_v8 = vand.u32 4294901760, %v366_v6  ;;  %v297_v10 = vsel %vm295_vm2, %v1592_v9, 0  ;;  %v835_v23 = vand.u32 4294901760, %v767_v20 }
  0x15   : > { %v330_v12 = vand.u32 4294901760, %v297_v10 }
  0x16   : > { %1218 = vperm.xlu0 %1457, %v1215_v7   ;;  %v368_v11 = vsub.f32 %v366_v6, %v367_v8  ;;  %v836_v28 = vsub.f32 %v767_v20, %v835_v23 }
  0x17   : > { %1355 = vmatpush3.msra.mxu0 %v330_v12  ;;  %v407_v14 = vsub.f32 %v297_v10, %v330_v12 }
  0x18   : > { %v369_v13 = vand.u32 4294901760, %v368_v11  ;;  %1364 = vmatprep.subr.mxu0 %v1501_v1  ;;  %v837_v33 = vand.u32 4294901760, %v836_v28 }
  0x19   : > { %v408_v15 = vand.u32 4294901760, %v407_v14 }
  0x1a   : > { %1357 = vmatmul.mubr.f32.vlgmr.msra.gmra.mxu0 %v369_v13  ;;  %v838_v39 = vsub.f32 %v836_v28, %v837_v33 }
  0x1b   : > { %1365 = vmatpush3.msra.mxu0 %v407_v14  ;;  %1366 = vmatprep.mubr.msk.f32.mxu0 %vm1502_vm0, %v1501_v1  ;;  %v409_v16 = vsub.f32 %v407_v14, %v408_v15 }
  0x1c   : > { %1374 = vmatprep.subr.mxu0 %v1501_v1  ;;  %v839_v44 = vand.u32 4294901760, %v838_v39 }
  0x1d   : > { %v410_v17 = vand.u32 4294901760, %v409_v16 }
  0x1e   : > { %1367 = vmatmul.mubr.f32.vlgmr.msra.gmra.mxu0 %v366_v6 }
  0x1f   : > { %1375 = vmatpush3.msra.mxu0 %v408_v15  ;;  %1376 = vmatprep.mubr.msk.f32.mxu0 %vm1502_vm0, %v1501_v1 }
  0x20   : > { %1384 = vmatprep.subr.mxu0 %v1501_v1  ;;  %1360 = vmatpush3.msra.mxu1 %v410_v17 }
  0x21   : > { %1362 = vmatmul.mubr.f32.vlgmr.msra.gmra.mxu1 %v365_v4  ;;  %1369 = vmatprep.subr.mxu1 %v1501_v1 }
  0x22   : > { %1370 = vmatpush3.msra.mxu1 %v330_v12  ;;  %1371 = vmatprep.mubr.msk.f32.mxu1 %vm1502_vm0, %v1501_v1 }
  0x23   : > { %1377 = vmatmul.mubr.f32.vlgmr.msra.gmra.mxu0 %v365_v4  ;;  %1379 = vmatprep.subr.mxu1 %v1501_v1 }
  0x24   : > { %1386 = vmatprep.mubr.msk.f32.mxu0 %vm1502_vm0, %v1501_v1 }
  0x25   : > { %1372 = vmatmul.mubr.f32.vlgmr.msra.gmra.mxu1 %v367_v8 }
  0x26   : > { %1380 = vmatpush3.msra.mxu1 %v330_v12  ;;  %1381 = vmatprep.mubr.msk.f32.mxu1 %vm1502_vm0, %v1501_v1 }
  0x27   : > { %1389 = vmatprep.subr.mxu1 %v1501_v1 }
  0x29   : > { %1382 = vmatmul.mubr.f32.vlgmr.msra.gmra.mxu1 %v365_v4 }
  0x2a   : > { %1391 = vmatprep.mubr.msk.f32.mxu1 %vm1502_vm0, %v1501_v1 }
  0x8d   : > { %v289_v24 = vpop.permute.xlu0 %288 }
  0x91   : > { %v1219_v19 = vpop.permute.xlu0 %1218 }
  0xda   : > { %v371_v21 = vpop.f32.mrf.mxu0 }
  0xdb   : > { %v372_v26 = vadd.f32 %v371_v21, %v289_v24 }
  0xdc   : > { %v1358_v22 = vpop.f32.mrf.mxu0 }
  0xde   : > { %v521_v25 = vpop.f32.mrf.mxu0 }
  0xe0   : > { %v1368_v27 = vpop.f32.mrf.mxu0 }
  0xe1   : > { %v447_v29 = vpop.f32.mrf.mxu1  ;;  %v1229_v27 = vpop.permute.xlu1 %1228 }
  0xe2   : > { %v448_v30 = vadd.f32 %v447_v29, %v372_v26 }
  0xe3   : > { %v1363_v31 = vpop.f32.mrf.mxu1  ;;  %v669_v32 = vpop.f32.mrf.mxu0 }
  0xe4   : > { %v522_v34 = vadd.f32 %v521_v25, %v448_v30 }
  0xe5   : > { %v595_v35 = vpop.f32.mrf.mxu1  ;;  %v1378_v36 = vpop.f32.mrf.mxu0 }
  0xe6   : > { %v596_v37 = vadd.f32 %v595_v35, %v522_v34 }
  0xe7   : > { %v1373_v38 = vpop.f32.mrf.mxu1 }
  0xe8   : > { %v670_v40 = vadd.f32 %v669_v32, %v596_v37 }
  0xe9   : > { %v741_v41 = vpop.f32.mrf.mxu1 }
  0xea   : > { %v742_v42 = vadd.f32 %v741_v41, %v670_v40 }
  0xeb   : > { %v1383_v43 = vpop.f32.mrf.mxu1 }
  0xec   : > { %v800_v45 = vand.u32 4294901760, %v742_v42  ;;  %v752_v50 = vmul.f32 %v742_v42, %v742_v42  ;;  %v745_v51 = vrot.slane %v742_v42, 4 }
  0xee   : > { %1385 = vmatpush3.msra.mxu0 %v800_v45  ;;  %v877_v46 = vsub.f32 %v742_v42, %v800_v45  ;;  %v753_v52 = vrot.slane %v752_v50, 4  ;;  %v746_v53 = vadd.f32 %v745_v51, %v742_v42 }
  0xef   : > { %1387 = vmatmul.mubr.f32.vlgmr.msra.gmra.mxu0 %v839_v44  ;;  %1394 = vmatprep.subr.mxu0 %v1501_v1 }
  0xf0   : > { %1395 = vmatpush3.msra.mxu0 %v877_v46  ;;  %1396 = vmatprep.mubr.msk.f32.mxu0 %vm1502_vm0, %v1501_v1  ;;  %v878_v47 = vand.u32 4294901760, %v877_v46  ;;  %v754_v54 = vadd.f32 %v753_v52, %v752_v50  ;;  %v747_v55 = vrot.slane %v746_v53, 2 }
  0xf1   : > { %1404 = vmatprep.subr.mxu0 %v1501_v1 }
  0xf2   : > { %v879_v48 = vsub.f32 %v877_v46, %v878_v47  ;;  %v748_v56 = vadd.f32 %v747_v55, %v746_v53  ;;  %v755_v57 = vrot.slane %v754_v54, 2 }
  0xf3   : > { %1397 = vmatmul.mubr.f32.vlgmr.msra.gmra.mxu0 %v836_v28 }
  0xf4   : > { %1405 = vmatpush3.msra.mxu0 %v878_v47  ;;  %v880_v49 = vand.u32 4294901760, %v879_v48  ;;  %1406 = vmatprep.mubr.msk.f32.mxu0 %vm1502_vm0, %v1501_v1  ;;  %v749_v58 = vrot.slane %v748_v56, 1  ;;  %v756_v59 = vadd.f32 %v755_v57, %v754_v54 }
  0xf6   : > { %1390 = vmatpush3.msra.mxu1 %v880_v49  ;;  %v750_v60 = vadd.f32 %v749_v58, %v748_v56  ;;  %v757_v61 = vrot.slane %v756_v59, 1 }
  0xf7   : > { %1392 = vmatmul.mubr.f32.vlgmr.msra.gmra.mxu1 %v835_v23  ;;  %1399 = vmatprep.subr.mxu1 %v1501_v1 }
  0xf8   : > { %1400 = vmatpush3.msra.mxu1 %v800_v45  ;;  %1401 = vmatprep.mubr.msk.f32.mxu1 %vm1502_vm0, %v1501_v1  ;;  %v751_v62 = vmul.f32 0.125, %v750_v60  ;;  %v758_v63 = vadd.f32 %v757_v61, %v756_v59 }
  0xf9   : > { %1409 = vmatprep.subr.mxu1 %v1501_v1  ;;  %1407 = vmatmul.mubr.f32.vlgmr.msra.gmra.mxu0 %v835_v23 }
  0xfa   : > { %v759_v0 = vmul.f32 0.125, %v758_v63  ;;  %v760_v2 = vmul.f32 %v751_v62, %v751_v62  ;;  %v1221_v22 = vmul.f32 %v1219_v19, %v751_v62 }
  0xfb   : > { %1402 = vmatmul.mubr.f32.vlgmr.msra.gmra.mxu1 %v837_v33 }
  0xfc   : > { %1410 = vmatpush3.msra.mxu1 %v800_v45  ;;  %1411 = vmatprep.mubr.msk.f32.mxu1 %vm1502_vm0, %v1501_v1  ;;  %v761_v3 = vsub.f32 %v759_v0, %v760_v2 }
  0xfe   : > { %v762_v5 = vadd.f32 1e-05, %v761_v3 }
  0xff   : > { %1412 = vmatmul.mubr.f32.vlgmr.msra.gmra.mxu1 %v835_v23 }
 0x100   : > { %1459 = vrsqrt.f32 %v762_v5 }
 0x10d   : > { %v1460_v25 = vpop.eup %1459 }
 0x1af   : > { %v841_v4 = vpop.f32.mrf.mxu0 }
 0x1b1   : > { %v1388_v1 = vpop.f32.mrf.mxu0 }
 0x1b3   : > { %v991_v6 = vpop.f32.mrf.mxu0 }
 0x1b5   : > { %v1398_v7 = vpop.f32.mrf.mxu0 }
 0x1b7   : > { %v917_v8 = vpop.f32.mrf.mxu1 }
 0x1b8   : > { %v918_v10 = vadd.f32 %v917_v8, %v841_v4 }
 0x1b9   : > { %v1393_v11 = vpop.f32.mrf.mxu1  ;;  %v1139_v12 = vpop.f32.mrf.mxu0 }
 0x1ba   : > { %v992_v13 = vadd.f32 %v991_v6, %v918_v10 }
 0x1bb   : > { %v1065_v14 = vpop.f32.mrf.mxu1  ;;  %v1408_v15 = vpop.f32.mrf.mxu0 }
 0x1bc   : > { %v1066_v16 = vadd.f32 %v1065_v14, %v992_v13 }
 0x1bd   : > { %v1403_v17 = vpop.f32.mrf.mxu1 }
 0x1be   : > { %v1140_v18 = vadd.f32 %v1139_v12, %v1066_v16 }
 0x1bf   : > { %v1211_v20 = vpop.f32.mrf.mxu1 }
 0x1c0   : > { %v1212_v21 = vadd.f32 %v1211_v20, %v1140_v18 }
 0x1c1   : > { %v1413_v23 = vpop.f32.mrf.mxu1 }
 0x1c2   : > { %v1222_v24 = vsub.f32 %v1212_v21, %v1221_v22 }
 0x1c4   : > { %v1223_v26 = vmul.f32 %v1460_v25, %v1222_v24 }
 0x1c6   : > { %v1224_v28 = vadd.f32 %v1223_v26, %v1592_v9 }
 0x1c8   : > { %v1231_v29 = vadd.f32 %v1229_v27, %v1224_v28 }
 0x1ca   : > { %1232 = vst [vmem:[%s282_s22] sm:$0xf] %v1231_v29 }
 0x1cb PF: > { %s16_s25 = sadd.s32 1, %s1499_s25   ;;  %s1659_s21 = smov %s1491_s23 }
 0x1cc   : > { %p13_p7 = scmp.ge.s32.totalorder %s16_s25, 6   ;;  %s1660_s22 = smov %s1495_s24 }
 0x1cd   : > { %s1661_s23 = smov %s1664_s26  ;;  %s1662_s24 = smov %s1668_s27 }
 0x1ce   :  { %15 = sbr.rel (!%p13_p7) target bundleno = 3 (0x3), region = 74 }

</bundles_post_ra>
